<compile_context>
chip_gen: v5e
topology: v5e:2x2
jax: 0.10.0
libtpu: 0.0.40
codegen_flags: <defaults>
</compile_context>

<pallas_src>
import jax
import jax.numpy as jnp
from jax.experimental import pallas as pl
from jax.experimental.pallas import tpu as pltpu

# Model hyperparameters (module __init__ / globals in the source file).
N_CHANNELS = 4
CENTRAL_RANGE = 32
D_LATENT = 16
D_HIDDEN = 64                               # true hidden width of the MLP
D_HIDDEN_PAD = 128                          # lane-dense padded hidden width
D_OUT = 2 * N_CHANNELS * CENTRAL_RANGE      # 256 = mean || log_sigma
HALF = N_CHANNELS * CENTRAL_RANGE           # 128 (vreg-aligned split point)


def _decoder_kernel(z_ref, w1_ref, b1_ref, w2_ref, b2_ref, w3_ref, b3_ref,
                    out_ref):
    # MLP decoder: Linear -> ReLU -> Linear -> ReLU -> Linear (all f32 on MXU).
    h = jnp.dot(z_ref[...], w1_ref[...], preferred_element_type=jnp.float32)
    h = jnp.maximum(h + b1_ref[...], 0.0)
    h = jnp.dot(h, w2_ref[...], preferred_element_type=jnp.float32)
    h = jnp.maximum(h + b2_ref[...], 0.0)
    h = jnp.dot(h, w3_ref[...], preferred_element_type=jnp.float32) + b3_ref[...]

    half = out_ref.shape[1] // 2
    out_ref[:, :half] = h[:, :half]            # X_hat (mean)
    out_ref[:, half:] = jnp.exp(h[:, half:])   # log_sig.exp()  (sigma)


def prepare_params(params):
    """Zero-pad the 64-wide hidden dimension to 128 lanes (done once)."""
    w1, b1, w2, b2, w3, b3 = params
    pad_h = D_HIDDEN_PAD - D_HIDDEN
    w1p = jnp.pad(w1, ((0, 0), (0, pad_h)))          # (16, 128)
    b1p = jnp.pad(b1, ((0, 0), (0, pad_h)))          # (1, 128)
    w2p = jnp.pad(w2, ((0, pad_h), (0, pad_h)))      # (128, 128)
    b2p = jnp.pad(b2, ((0, 0), (0, pad_h)))          # (1, 128)
    w3p = jnp.pad(w3, ((0, pad_h), (0, 0)))          # (128, 256)
    return (w1p.astype(jnp.float32), b1p.astype(jnp.float32),
            w2p.astype(jnp.float32), b2p.astype(jnp.float32),
            w3p.astype(jnp.float32), b3.astype(jnp.float32))


def decoder_forward(z, padded_params, *, tb=256):
    """Returns (mean, sigma) of the Normal distribution, each shaped
    (B, 1, N_CHANNELS, CENTRAL_RANGE) in float32."""
    w1, b1, w2, b2, w3, b3 = padded_params
    # torch: z = z.view(z.shape[0], -1)
    z2d = z.reshape(z.shape[0], -1).astype(jnp.float32)
    B = z2d.shape[0]

    # Batch tile: multiple of 8 sublanes, capped by the actual batch.
    TB = min(tb, max(B, 8))
    TB = ((TB + 7) // 8) * 8
    Bp = pl.cdiv(B, TB) * TB
    if Bp != B:
        z2d = jnp.pad(z2d, ((0, Bp - B), (0, 0)))

    grid = (Bp // TB,)
    resident = lambda a: pl.BlockSpec(a.shape, lambda i: (0,) * a.ndim)

    out = pl.pallas_call(
        _decoder_kernel,
        out_shape=jax.ShapeDtypeStruct((Bp, D_OUT), jnp.float32),
        grid=grid,
        in_specs=[
            pl.BlockSpec((TB, D_LATENT), lambda i: (i, 0)),   # z rows: streamed
            resident(w1), resident(b1),                        # weights: VMEM-
            resident(w2), resident(b2),                        # resident across
            resident(w3), resident(b3),                        # the whole grid
        ],
        out_specs=pl.BlockSpec((TB, D_OUT), lambda i: (i, 0)),
        compiler_params=pltpu.CompilerParams(
            dimension_semantics=("parallel",)),                # v7x: 2 TCs
    )(z2d, w1, b1, w2, b2, w3, b3)

    out = out[:B]
    mean = out[:, :HALF].reshape(-1, 1, N_CHANNELS, CENTRAL_RANGE)
    sigma = out[:, HALF:].reshape(-1, 1, N_CHANNELS, CENTRAL_RANGE)
    # TODO(synk): torch returns dist.Normal(mean, sigma); we return its
    # parameters (mean, sigma) since a Distribution object has no array form.
    return mean, sigma


def init_params(key):
    """Unpadded (true 64-wide hidden) parameters, matching the torch MLP."""
    k1, k2, k3 = jax.random.split(key, 3)
    scale1 = 1.0 / jnp.sqrt(D_LATENT)
    scale2 = 1.0 / jnp.sqrt(D_HIDDEN)
    w1 = jax.random.uniform(k1, (D_LATENT, D_HIDDEN), jnp.float32, -scale1, scale1)
    b1 = jnp.zeros((1, D_HIDDEN), jnp.float32)
    w2 = jax.random.uniform(k2, (D_HIDDEN, D_HIDDEN), jnp.float32, -scale2, scale2)
    b2 = jnp.zeros((1, D_HIDDEN), jnp.float32)
    w3 = jax.random.uniform(k3, (D_HIDDEN, D_OUT), jnp.float32, -scale2, scale2)
    b3 = jnp.zeros((1, D_OUT), jnp.float32)
    return (w1, b1, w2, b2, w3, b3)


def reference_forward(z, params):
    w1, b1, w2, b2, w3, b3 = params
    z2d = z.reshape(z.shape[0], -1)
    h = jnp.maximum(z2d @ w1 + b1, 0.0)
    h = jnp.maximum(h @ w2 + b2, 0.0)
    h = h @ w3 + b3
    mean = h[:, :HALF].reshape(-1, 1, N_CHANNELS, CENTRAL_RANGE)
    sigma = jnp.exp(h[:, HALF:]).reshape(-1, 1, N_CHANNELS, CENTRAL_RANGE)
    return mean, sigma


if __name__ == "__main__":
    key = jax.random.PRNGKey(0)
    kz, kp = jax.random.split(key)
    B = 8
    z = jax.random.normal(kz, (B, D_LATENT), jnp.float32)
    params = init_params(kp)
    padded_params = prepare_params(params)   # pad once, reuse every call

    mean, sigma = decoder_forward(z, padded_params)
    jax.block_until_ready((mean, sigma))

    # sanity check against plain-JAX reference (unpadded params)
    ref_mean, ref_sigma = reference_forward(z, params)
    assert mean.shape == (B, 1, N_CHANNELS, CENTRAL_RANGE)
    assert sigma.shape == (B, 1, N_CHANNELS, CENTRAL_RANGE)
    assert jnp.allclose(mean, ref_mean, atol=1e-5, rtol=1e-5)
    assert jnp.allclose(sigma, ref_sigma, atol=1e-5, rtol=1e-5)

    # also exercise the batched-grid path (B not a multiple of the tile)
    B2 = 300
    z2 = jax.random.normal(kz, (B2, D_LATENT), jnp.float32)
    m2, s2 = decoder_forward(z2, padded_params, tb=128)
    jax.block_until_ready((m2, s2))
    rm2, rs2 = reference_forward(z2, params)
    assert jnp.allclose(m2, rm2, atol=1e-5, rtol=1e-5)
    assert jnp.allclose(s2, rs2, atol=1e-5, rtol=1e-5)

    print("KERNEL_OK")
</pallas_src>

<mosaic_0001>
module attributes {stable_mosaic.version = 11 : i64} {
  func.func @_decoder_kernel(%arg0: i32, %arg1: memref<8x16xf32, #tpu.memory_space<vmem>>, %arg2: memref<16x128xf32, #tpu.memory_space<vmem>>, %arg3: memref<1x128xf32, #tpu.memory_space<vmem>>, %arg4: memref<128x128xf32, #tpu.memory_space<vmem>>, %arg5: memref<1x128xf32, #tpu.memory_space<vmem>>, %arg6: memref<128x256xf32, #tpu.memory_space<vmem>>, %arg7: memref<1x256xf32, #tpu.memory_space<vmem>>, %arg8: memref<8x256xf32, #tpu.memory_space<vmem>>) attributes {dimension_semantics = [#tpu.dimension_semantics<parallel>], iteration_bounds = array<i64: 1>, scalar_prefetch = 0 : i64, scratch_operands = 0 : i64, tpu.core_type = #tpu.core_type<tc>, window_params = [{transform_indices = @transform_0, window_bounds = array<i64: 8, 16>}, {pipeline_mode = #tpu.pipeline_mode<synchronous>, transform_indices = @transform_1, window_bounds = array<i64: 16, 128>}, {pipeline_mode = #tpu.pipeline_mode<synchronous>, transform_indices = @transform_2, window_bounds = array<i64: 1, 128>}, {pipeline_mode = #tpu.pipeline_mode<synchronous>, transform_indices = @transform_3, window_bounds = array<i64: 128, 128>}, {pipeline_mode = #tpu.pipeline_mode<synchronous>, transform_indices = @transform_4, window_bounds = array<i64: 1, 128>}, {pipeline_mode = #tpu.pipeline_mode<synchronous>, transform_indices = @transform_5, window_bounds = array<i64: 128, 256>}, {pipeline_mode = #tpu.pipeline_mode<synchronous>, transform_indices = @transform_6, window_bounds = array<i64: 1, 256>}, {transform_indices = @transform_7, window_bounds = array<i64: 8, 256>}]} {
    %c0 = arith.constant 0 : index
    %c0_0 = arith.constant 0 : index
    %0 = vector.load %arg1[%c0, %c0_0] : memref<8x16xf32, #tpu.memory_space<vmem>>, vector<8x16xf32>
    %c0_1 = arith.constant 0 : index
    %c0_2 = arith.constant 0 : index
    %1 = vector.load %arg2[%c0_1, %c0_2] : memref<16x128xf32, #tpu.memory_space<vmem>>, vector<16x128xf32>
    %cst = arith.constant dense<0.000000e+00> : vector<8x128xf32>
    %2 = tpu.matmul %0, %1, %cst {dimension_numbers = #tpu.dot_dimension_numbers<[1], [0], [0], [1], [0, 0, 1, 1], [], []>} : vector<8x16xf32>, vector<16x128xf32>, vector<8x128xf32> -> vector<8x128xf32>
    %c0_3 = arith.constant 0 : index
    %c0_4 = arith.constant 0 : index
    %3 = vector.load %arg3[%c0_3, %c0_4] : memref<1x128xf32, #tpu.memory_space<vmem>>, vector<1x128xf32>
    %4 = vector.broadcast %3 : vector<1x128xf32> to vector<8x128xf32>
    %5 = arith.addf %2, %4 : vector<8x128xf32>
    %cst_5 = arith.constant 0.000000e+00 : f32
    %6 = vector.broadcast %cst_5 : f32 to vector<8x128xf32>
    %7 = arith.maximumf %5, %6 : vector<8x128xf32>
    %c0_6 = arith.constant 0 : index
    %c0_7 = arith.constant 0 : index
    %8 = vector.load %arg4[%c0_6, %c0_7] : memref<128x128xf32, #tpu.memory_space<vmem>>, vector<128x128xf32>
    %cst_8 = arith.constant dense<0.000000e+00> : vector<8x128xf32>
    %9 = tpu.matmul %7, %8, %cst_8 {dimension_numbers = #tpu.dot_dimension_numbers<[1], [0], [0], [1], [0, 0, 1, 1], [], []>} : vector<8x128xf32>, vector<128x128xf32>, vector<8x128xf32> -> vector<8x128xf32>
    %c0_9 = arith.constant 0 : index
    %c0_10 = arith.constant 0 : index
    %10 = vector.load %arg5[%c0_9, %c0_10] : memref<1x128xf32, #tpu.memory_space<vmem>>, vector<1x128xf32>
    %11 = vector.broadcast %10 : vector<1x128xf32> to vector<8x128xf32>
    %12 = arith.addf %9, %11 : vector<8x128xf32>
    %cst_11 = arith.constant 0.000000e+00 : f32
    %13 = vector.broadcast %cst_11 : f32 to vector<8x128xf32>
    %14 = arith.maximumf %12, %13 : vector<8x128xf32>
    %c0_12 = arith.constant 0 : index
    %c0_13 = arith.constant 0 : index
    %15 = vector.load %arg6[%c0_12, %c0_13] : memref<128x256xf32, #tpu.memory_space<vmem>>, vector<128x256xf32>
    %cst_14 = arith.constant dense<0.000000e+00> : vector<8x256xf32>
    %16 = tpu.matmul %14, %15, %cst_14 {dimension_numbers = #tpu.dot_dimension_numbers<[1], [0], [0], [1], [0, 0, 1, 1], [], []>} : vector<8x128xf32>, vector<128x256xf32>, vector<8x256xf32> -> vector<8x256xf32>
    %c0_15 = arith.constant 0 : index
    %c0_16 = arith.constant 0 : index
    %17 = vector.load %arg7[%c0_15, %c0_16] : memref<1x256xf32, #tpu.memory_space<vmem>>, vector<1x256xf32>
    %18 = vector.broadcast %17 : vector<1x256xf32> to vector<8x256xf32>
    %19 = arith.addf %16, %18 : vector<8x256xf32>
    %20 = vector.extract_strided_slice %19 {offsets = [0, 0], sizes = [8, 128], strides = [1, 1]} : vector<8x256xf32> to vector<8x128xf32>
    %c0_17 = arith.constant 0 : index
    %c0_18 = arith.constant 0 : index
    %21 = vector.load %arg8[%c0_17, %c0_18] : memref<8x256xf32, #tpu.memory_space<vmem>>, vector<8x128xf32>
    tpu.vector_store %arg8[%c0_17, %c0_18], %20 {strides = array<i32>} : memref<8x256xf32, #tpu.memory_space<vmem>>, vector<8x128xf32>,
    %22 = vector.extract_strided_slice %19 {offsets = [0, 128], sizes = [8, 128], strides = [1, 1]} : vector<8x256xf32> to vector<8x128xf32>
    %23 = math.exp %22 : vector<8x128xf32>
    %c0_19 = arith.constant 0 : index
    %c128 = arith.constant 128 : index
    %24 = vector.load %arg8[%c0_19, %c128] : memref<8x256xf32, #tpu.memory_space<vmem>>, vector<8x128xf32>
    tpu.vector_store %arg8[%c0_19, %c128], %23 {strides = array<i32>} : memref<8x256xf32, #tpu.memory_space<vmem>>, vector<8x128xf32>,
    return
  }
  func.func @transform_0(%arg0: i32) -> (i32, i32) {
    %c0_i32 = arith.constant 0 : i32
    %c0_i32_0 = arith.constant 0 : i32
    return %arg0, %c0_i32 : i32, i32
  }
  func.func @transform_1(%arg0: i32) -> (i32, i32) {
    %c0_i32 = arith.constant 0 : i32
    %c0_i32_0 = arith.constant 0 : i32
    %c0_i32_1 = arith.constant 0 : i32
    return %c0_i32, %c0_i32_0 : i32, i32
  }
  func.func @transform_2(%arg0: i32) -> (i32, i32) {
    %c0_i32 = arith.constant 0 : i32
    %c0_i32_0 = arith.constant 0 : i32
    %c0_i32_1 = arith.constant 0 : i32
    return %c0_i32, %c0_i32_0 : i32, i32
  }
  func.func @transform_3(%arg0: i32) -> (i32, i32) {
    %c0_i32 = arith.constant 0 : i32
    %c0_i32_0 = arith.constant 0 : i32
    %c0_i32_1 = arith.constant 0 : i32
    return %c0_i32, %c0_i32_0 : i32, i32
  }
  func.func @transform_4(%arg0: i32) -> (i32, i32) {
    %c0_i32 = arith.constant 0 : i32
    %c0_i32_0 = arith.constant 0 : i32
    %c0_i32_1 = arith.constant 0 : i32
    return %c0_i32, %c0_i32_0 : i32, i32
  }
  func.func @transform_5(%arg0: i32) -> (i32, i32) {
    %c0_i32 = arith.constant 0 : i32
    %c0_i32_0 = arith.constant 0 : i32
    %c0_i32_1 = arith.constant 0 : i32
    return %c0_i32, %c0_i32_0 : i32, i32
  }
  func.func @transform_6(%arg0: i32) -> (i32, i32) {
    %c0_i32 = arith.constant 0 : i32
    %c0_i32_0 = arith.constant 0 : i32
    %c0_i32_1 = arith.constant 0 : i32
    return %c0_i32, %c0_i32_0 : i32, i32
  }
  func.func @transform_7(%arg0: i32) -> (i32, i32) {
    %c0_i32 = arith.constant 0 : i32
    %c0_i32_0 = arith.constant 0 : i32
    return %arg0, %c0_i32 : i32, i32
  }
}

</mosaic_0001>

<bundles_post_ra>
// kernel: tpu_custom_call.1
= control target key start
LH: loop header
LB: loop body
LE: loop exit
PB: predicated region body
PF: predicated region fallthrough
CT: control target
= control target key end

     0   :  { %12 = vsyncpa [#allocation3], 0  ;;  %s516_s0 = inlined_call_operand.hbm [shape: f32[8,16], index: 0, kind: input, shape index: {}]   ;;  %s517_s1 = inlined_call_operand.hbm [shape: f32[16,128], index: 1, kind: input, shape index: {}]   ;;  %s518_s2 = inlined_call_operand.vmem [shape: f32[1,128], index: 2, kind: input, shape index: {}]   ;;  %s519_s3 = inlined_call_operand.hbm [shape: f32[128,128], index: 3, kind: input, shape index: {}]   ;;  %s520_s4 = inlined_call_operand.hbm [shape: f32[1,128], index: 4, kind: input, shape index: {}]   ;;  %s521_s5 = inlined_call_operand.hbm [shape: f32[128,256], index: 5, kind: input, shape index: {}]   ;;  %s522_s6 = inlined_call_operand.vmem [shape: f32[1,256], index: 6, kind: input, shape index: {}]   ;;  %s523_s7 = inlined_call_operand.hbm [shape: f32[8,256], index: 7, kind: output, shape index: {}]  }
   0x1   :  { %13 = vsyncpa [#allocation6], 0 }
   0x2   :  { %14 = vsyncpa [#allocation9], 0  ;;  %s31_s26 = sshll.u32 %s517_s1, 4  ;;  %s32_s26 = int_to_ptr.hbm [resolvable:$true] %s31_s26 }
   0x3   :  { %15 = vsyncpa [#allocation4], 0  ;;  %s442_s27 = smov [#allocation5]   ;;  %s60_s8 = sshll.u32 %s520_s4, 4  ;;  %s61_s8 = int_to_ptr.hbm [resolvable:$true] %s60_s8 }
   0x4   :  { %s33_s28 = sshll.u32 %s442_s27, 4  ;;  %s443_s9 = smov 128   ;;  %s34_s28 = int_to_ptr.vmem [resolvable:$true] %s33_s28 }
   0x5   :  { %s444_s10 = smov 8   ;;  %s445_s11 = smov [#allocation8]  }
   0x6   :  { %39 = dma.hbm_to_vmem [thread:$0]  %s32_s26, 256, %s34_s28, [#allocation6], %s443_s9, %s443_s9, %s444_s10  }
   0x7   :  { %s62_s12 = sshll.u32 %s445_s11, 4  ;;  %s21_s15 = sshll.u32 %s516_s0, 4  ;;  %s63_s12 = int_to_ptr.vmem [resolvable:$true] %s62_s12  ;;  %s22_s15 = int_to_ptr.hbm [resolvable:$true] %s21_s15 }
   0x8   :  { %65 = dma.hbm_to_vmem [thread:$0]  %s61_s8, 16, %s63_s12, [#allocation9]  }
   0x9   :  { %s46_s17 = sshll.u32 %s519_s3, 4  ;;  %s446_s18 = smov [#allocation2]   ;;  %s47_s17 = int_to_ptr.hbm [resolvable:$true] %s46_s17 }
   0xa   :  { %s23_s19 = sshll.u32 %s446_s18, 4  ;;  %s447_s4 = smov [#allocation7]   ;;  %s24_s19 = int_to_ptr.vmem [resolvable:$true] %s23_s19 }
   0xb   :  { %26 = dma.hbm_to_vmem [thread:$0]  %s22_s15, 128, %s24_s19, [#allocation3]  }
   0xc   :  { %s48_s20 = sshll.u32 %s447_s4, 4  ;;  %s70_s23 = sshll.u32 %s521_s5, 4  ;;  %s49_s20 = int_to_ptr.vmem [resolvable:$true] %s48_s20  ;;  %s71_s23 = int_to_ptr.hbm [resolvable:$true] %s70_s23 }
   0xd   :  { %54 = dma.hbm_to_vmem [thread:$0]  %s47_s17, 2048, %s49_s20, [#allocation6], %s443_s9, %s443_s9, %s444_s10  }
   0xe   :  { %s448_s0 = smov [#allocation10]   ;;  %s449_s25 = smov 256  }
   0xf   :  { %s72_s24 = sshll.u32 %s448_s0, 4  ;;  %s450_s26 = smov 16   ;;  %s73_s24 = int_to_ptr.vmem [resolvable:$true] %s72_s24 }
  0x10   :  { %78 = dma.hbm_to_vmem [thread:$0]  %s71_s23, 4096, %s73_s24, [#allocation9], %s449_s25, %s449_s25, %s450_s26  }
  0x11   :  { %434 = dma.done.wait [#allocation3], 128  }
  0x12   :  { %435 = vsyncadd [#allocation3], 4294967168 }
  0x13   :  { %436 = dma.done.wait [#allocation6], 2304  }
  0x14   :  { %437 = vsyncadd [#allocation6], 4294964992 }
  0x15   :  { %438 = dma.done.wait [#allocation9], 4112  }
  0x16   :  { %439 = vsyncadd [#allocation9], 4294963184  ;;  %v103_v0 = vld [vmem:[#allocation5 + $0x8] sm:$0xff]  ;;  %v102_v1 = vld [vmem:[#allocation5] sm:$0xff]  ;;  %vm108_vm0 = vcmask 130048   ;;  %s451_s28 = smov [#allocation11]  }
  0x17   :  { %126 = vmatpush.msra.mxu0 %v103_v0  ;;  %v101_v2 = vld [vmem:[#allocation2] sm:$0xff]  ;;  %v148_v3 = vld [vmem:[#allocation7 + $0x78] sm:$0xff]  ;;  %v147_v4 = vld [vmem:[#allocation7 + $0x70] sm:$0xff]  ;;  %s261_s29 = sshll.u32 %s451_s28, 4  ;;  %s263_s9 = sshll.u32 %s523_s7, 4  ;;  %s262_s29 = int_to_ptr.vmem [resolvable:$true] %s261_s29  ;;  %s264_s9 = int_to_ptr.hbm [resolvable:$true] %s263_s9 }
  0x18   :  { %153 = vmatpush.msra.mxu1 %v148_v3  ;;  %v146_v5 = vld [vmem:[#allocation7 + $0x68] sm:$0xff]  ;;  %v145_v6 = vld [vmem:[#allocation7 + $0x60] sm:$0xff]  ;;  %v144_v7 = vld [vmem:[#allocation7 + $0x58] sm:$0xff] }
  0x19   :  { %127 = vmatpush.msra.mxu0 %v102_v1  ;;  %v143_v8 = vld [vmem:[#allocation7 + $0x50] sm:$0xff]  ;;  %v142_v9 = vld [vmem:[#allocation7 + $0x48] sm:$0xff]  ;;  %v141_v10 = vld [vmem:[#allocation7 + $0x40] sm:$0xff] }
  0x1a   :  { %275 = vmatmul.msk.f32.vlgmr.msra.gmra.mxu0 %vm108_vm0, %v101_v2  ;;  %154 = vmatpush.msra.mxu1 %v147_v4  ;;  %v140_v11 = vld [vmem:[#allocation7 + $0x38] sm:$0xff]  ;;  %v139_v12 = vld [vmem:[#allocation7 + $0x30] sm:$0xff]  ;;  %v138_v13 = vld [vmem:[#allocation7 + $0x28] sm:$0xff] }
  0x1b   :  { %v137_v14 = vld [vmem:[#allocation7 + $0x20] sm:$0xff]  ;;  %v136_v15 = vld [vmem:[#allocation7 + $0x18] sm:$0xff]  ;;  %v135_v16 = vld [vmem:[#allocation7 + $0x10] sm:$0xff] }
  0x1c   :  { %155 = vmatpush.msra.mxu1 %v146_v5  ;;  %v134_v17 = vld [vmem:[#allocation7 + $0x8] sm:$0xff]  ;;  %v133_v18 = vld [vmem:[#allocation7] sm:$0xff]  ;;  %v204_v19 = vld [vmem:[#allocation10 + $0xf0] sm:$0xff] }
  0x1d   :  { %v205_v20 = vld [vmem:[#allocation10 + $0xf8] sm:$0xff]  ;;  %v202_v21 = vld [vmem:[#allocation10 + $0xe0] sm:$0xff]  ;;  %212 = vmatpush.msra.mxu2 %v204_v19  ;;  %v203_v22 = vld [vmem:[#allocation10 + $0xe8] sm:$0xff] }
  0x1e   :  { %156 = vmatpush.msra.mxu1 %v145_v6  ;;  %232 = vmatpush.msra.mxu3 %v205_v20  ;;  %v200_v23 = vld [vmem:[#allocation10 + $0xd0] sm:$0xff]  ;;  %v201_v24 = vld [vmem:[#allocation10 + $0xd8] sm:$0xff]  ;;  %v198_v25 = vld [vmem:[#allocation10 + $0xc0] sm:$0xff] }
  0x1f   :  { %213 = vmatpush.msra.mxu2 %v202_v21  ;;  %v199_v26 = vld [vmem:[#allocation10 + $0xc8] sm:$0xff]  ;;  %v196_v27 = vld [vmem:[#allocation10 + $0xb0] sm:$0xff]  ;;  %v197_v28 = vld [vmem:[#allocation10 + $0xb8] sm:$0xff] }
  0x20   :  { %157 = vmatpush.msra.mxu1 %v144_v7  ;;  %233 = vmatpush.msra.mxu3 %v203_v22  ;;  %v194_v29 = vld [vmem:[#allocation10 + $0xa0] sm:$0xff]  ;;  %v195_v30 = vld [vmem:[#allocation10 + $0xa8] sm:$0xff]  ;;  %v192_v31 = vld [vmem:[#allocation10 + $0x90] sm:$0xff] }
  0x21   :  { %214 = vmatpush.msra.mxu2 %v200_v23  ;;  %v193_v32 = vld [vmem:[#allocation10 + $0x98] sm:$0xff]  ;;  %v190_v33 = vld [vmem:[#allocation10 + $0x80] sm:$0xff]  ;;  %v191_v34 = vld [vmem:[#allocation10 + $0x88] sm:$0xff] }
  0x22   :  { %158 = vmatpush.msra.mxu1 %v143_v8  ;;  %234 = vmatpush.msra.mxu3 %v201_v24  ;;  %v188_v35 = vld [vmem:[#allocation10 + $0x70] sm:$0xff]  ;;  %v189_v36 = vld [vmem:[#allocation10 + $0x78] sm:$0xff]  ;;  %v186_v37 = vld [vmem:[#allocation10 + $0x60] sm:$0xff] }
  0x23   :  { %215 = vmatpush.msra.mxu2 %v198_v25  ;;  %v187_v38 = vld [vmem:[#allocation10 + $0x68] sm:$0xff]  ;;  %v184_v39 = vld [vmem:[#allocation10 + $0x50] sm:$0xff]  ;;  %v185_v40 = vld [vmem:[#allocation10 + $0x58] sm:$0xff] }
  0x24   :  { %159 = vmatpush.msra.mxu1 %v142_v9  ;;  %235 = vmatpush.msra.mxu3 %v199_v26  ;;  %v182_v41 = vld [vmem:[#allocation10 + $0x40] sm:$0xff]  ;;  %v183_v42 = vld [vmem:[#allocation10 + $0x48] sm:$0xff]  ;;  %v180_v43 = vld [vmem:[#allocation10 + $0x30] sm:$0xff] }
  0x25   :  { %216 = vmatpush.msra.mxu2 %v196_v27  ;;  %v181_v44 = vld [vmem:[#allocation10 + $0x38] sm:$0xff]  ;;  %v286_v45 = vld [vmem:[%s518_s2] ss:$0 sm:$0xff]  ;;  %v179_v50 = vld [vmem:[#allocation10 + $0x28] sm:$0xff] }
  0x26   :  { %160 = vmatpush.msra.mxu1 %v141_v10  ;;  %236 = vmatpush.msra.mxu3 %v197_v28  ;;  %v178_v49 = vld [vmem:[#allocation10 + $0x20] sm:$0xff]  ;;  %v176_v51 = vld [vmem:[#allocation10 + $0x10] sm:$0xff]  ;;  %v177_v52 = vld [vmem:[#allocation10 + $0x18] sm:$0xff] }
  0x27   :  { %217 = vmatpush.msra.mxu2 %v194_v29  ;;  %v174_v53 = vld [vmem:[#allocation10] sm:$0xff]  ;;  %v175_v54 = vld [vmem:[#allocation10 + $0x8] sm:$0xff]  ;;  %v287_v55 = vld [vmem:[#allocation8] ss:$0 sm:$0xff] }
  0x28   :  { %161 = vmatpush.msra.mxu1 %v140_v11  ;;  %237 = vmatpush.msra.mxu3 %v195_v30  ;;  %v206_v59 = vld [vmem:[%s522_s6] sm:$0x3] }
  0x29   :  { %218 = vmatpush.msra.mxu2 %v192_v31  ;;  %v208_v60 = vperm.slane %v206_v59, 0  ;;  %v209_v61 = vperm.slane %v206_v59, 1 }
  0x2a   :  { %162 = vmatpush.msra.mxu1 %v139_v12  ;;  %238 = vmatpush.msra.mxu3 %v193_v32 }
  0x2b   :  { %219 = vmatpush.msra.mxu2 %v190_v33 }
  0x2c   :  { %163 = vmatpush.msra.mxu1 %v138_v13  ;;  %239 = vmatpush.msra.mxu3 %v191_v34 }
  0x2d   :  { %220 = vmatpush.msra.mxu2 %v188_v35 }
  0x2e   :  { %164 = vmatpush.msra.mxu1 %v137_v14  ;;  %240 = vmatpush.msra.mxu3 %v189_v36 }
  0x2f   :  { %221 = vmatpush.msra.mxu2 %v186_v37 }
  0x30   :  { %165 = vmatpush.msra.mxu1 %v136_v15  ;;  %241 = vmatpush.msra.mxu3 %v187_v38 }
  0x31   :  { %222 = vmatpush.msra.mxu2 %v184_v39 }
  0x32   :  { %166 = vmatpush.msra.mxu1 %v135_v16  ;;  %242 = vmatpush.msra.mxu3 %v185_v40 }
  0x33   :  { %223 = vmatpush.msra.mxu2 %v182_v41 }
  0x34   :  { %167 = vmatpush.msra.mxu1 %v134_v17  ;;  %243 = vmatpush.msra.mxu3 %v183_v42 }
  0x35   :  { %224 = vmatpush.msra.mxu2 %v180_v43 }
  0x36   :  { %168 = vmatpush.msra.mxu1 %v133_v18  ;;  %244 = vmatpush.msra.mxu3 %v181_v44 }
  0x37   :  { %225 = vmatpush.msra.mxu2 %v178_v49 }
  0x38   :  { %245 = vmatpush.msra.mxu3 %v179_v50 }
  0x39   :  { %226 = vmatpush.msra.mxu2 %v176_v51 }
  0x3a   :  { %246 = vmatpush.msra.mxu3 %v177_v52 }
  0x3b   :  { %227 = vmatpush.msra.mxu2 %v174_v53 }
  0x3c   :  { %247 = vmatpush.msra.mxu3 %v175_v54 }
  0x97   :  { %v129_v46 = vpop.f32.mrf.mxu0 }
  0x98   :  { %v130_v47 = vadd.f32 %v286_v45, %v129_v46 }
  0x9a   :  { %v132_v48 = vmax.f32 %v130_v47, 0.0 }
  0x9c   :  { %169 = vmatmul.f32.vlgmr.msra.gmra.mxu1 %v132_v48 }
 0x119   :  { %v170_v56 = vpop.f32.mrf.mxu1 }
 0x11a   :  { %v171_v57 = vadd.f32 %v287_v55, %v170_v56 }
 0x11c   :  { %v173_v58 = vmax.f32 %v171_v57, 0.0 }
 0x11e   :  { %228 = vmatmul.f32.vlgmr.msra.gmra.mxu2 %v173_v58  ;;  %248 = vmatmul.f32.vlgmr.msra.gmra.mxu3 %v173_v58 }
 0x1a1   :  { %v229_v62 = vpop.f32.mrf.mxu2  ;;  %v249_v63 = vpop.f32.mrf.mxu3 }
 0x1a2   :  { %v230_v0 = vadd.f32 %v229_v62, %v208_v60  ;;  %v250_v1 = vadd.f32 %v249_v63, %v209_v61 }
 0x1a4   :  { %252 = vst [vmem:[#allocation11] sm:$0xff] %v230_v0  ;;  %v253_v2 = vmul.f32 1.442695, %v250_v1 }
 0x1a6   :  { %288 = vpow2.f32 %v253_v2 }
 0x1ac   :  { %v289_v3 = vpop.eup %288 }
 0x1ad   :  { %255 = vst [vmem:[#allocation11 + $0x8] sm:$0xff] %v289_v3 }
 0x1ae   :  { %266 = dma.vmem_to_hbm [thread:$0]  %s262_s29, 256, %s264_s9, [#allocation4]  }
 0x1af   :  { %440 = dma.done.wait [#allocation4], 256  }
 0x1b0   :  { %441 = vsyncadd [#allocation4], 4294967040 }
 0x1b1   :  { %271 = vsyncpa [#allocation3], 1 }
 0x1b2   :  { %272 = vsyncpa [#allocation6], 1 }
 0x1b3   :  { %273 = vsyncpa [#allocation9], 1 }
 0x1b4   :  { %274 = vsyncpa [#allocation4], 1 }

</bundles_post_ra>
